<compile_context>
chip_gen: v7x
topology: tpu7x:2x2x1
jax: 0.10.0
libtpu: 0.0.40
codegen_flags: <defaults>
</compile_context>

<pallas_src>
import functools

import jax
import jax.numpy as jnp
from jax import lax
from jax.experimental import pallas as pl
from jax.experimental.pallas import tpu as pltpu


def _round_up(x, m):
    return (x + m - 1) // m * m


def _mlp_kernel(x_ref, w1_ref, b1_ref, w2_ref, b2_ref, o_ref, *, sub_rows):
    # Per (modality, row-tile) grid point (leading modality axis squeezed):
    #   x_ref : (tile_rows, token_dim)
    #   w1_ref: (token_dim, hidden_dim)   same block across all row tiles
    #   b1_ref: (1, hidden_dim)
    #   w2_ref: (hidden_dim, sense_dim)
    #   b2_ref: (1, sense_dim)
    #   o_ref : (tile_rows, sense_dim)
    tile_rows = x_ref.shape[0]
    hidden_dim = w1_ref.shape[1]
    sense_dim = w2_ref.shape[1]
    n_sub = tile_rows // sub_rows

    w1 = w1_ref[...]
    w2 = w2_ref[...]
    # Hoist the bias broadcasts out of the unrolled sub-row loop (JAX does not
    # CSE broadcast_in_dim, so doing `+ b` inside would re-emit it per chunk).
    b1 = jnp.broadcast_to(b1_ref[...], (sub_rows, hidden_dim))
    b2 = jnp.broadcast_to(b2_ref[...], (sub_rows, sense_dim))

    def compute(r0):
        x = x_ref[pl.ds(r0, sub_rows), :]
        h = jnp.dot(x, w1, preferred_element_type=jnp.float32) + b1
        h = jnp.maximum(h, 0.0)
        y = jnp.dot(h.astype(w2.dtype), w2, preferred_element_type=jnp.float32) + b2
        o_ref[pl.ds(r0, sub_rows), :] = y.astype(o_ref.dtype)

    if n_sub <= 1:
        compute(0)
    else:
        # Sub-chunk the row tile so the ReLU intermediate stays small.
        def body(s, carry):
            compute(pl.multiple_of(s * sub_rows, sub_rows))
            return carry

        lax.fori_loop(0, n_sub, body, 0, unroll=True)


@jax.jit
def _fused_sense_forward(x_stacked, w1s, b1s, w2s, b2s):
    """Apply the token-level MLP head for all modalities in one pallas_call.

    x_stacked: [n_modals, rows, token_dim]  (compute dtype)
    w1s: [n_modals, token_dim, hidden]   b1s: [n_modals, 1, hidden]
    w2s: [n_modals, hidden, sense]       b2s: [n_modals, 1, sense]
    returns [n_modals, rows, sense] in the compute dtype.
    """
    n_modals, rows, token_dim = x_stacked.shape
    hidden_dim = w1s.shape[2]
    sense_dim = w2s.shape[2]
    out_dtype = x_stacked.dtype

    # Row tiling: large tiles amortize per-grid-step overhead; boundary blocks
    # are masked by Pallas (no wrapper pad / slice passes).  Second-minor block
    # dims must stay multiples of 8 (16 for bf16 sublane packing).
    row_align = 16 if x_stacked.dtype == jnp.bfloat16 else 8
    tile_rows = min(1024, _round_up(rows, row_align))
    sub_rows = 256 if tile_rows % 256 == 0 else tile_rows

    grid = (n_modals, pl.cdiv(rows, tile_rows))
    kernel = functools.partial(_mlp_kernel, sub_rows=sub_rows)

    return pl.pallas_call(
        kernel,
        out_shape=jax.ShapeDtypeStruct((n_modals, rows, sense_dim), out_dtype),
        grid_spec=pltpu.PrefetchScalarGridSpec(
            num_scalar_prefetch=0,
            grid=grid,
            in_specs=[
                pl.BlockSpec((None, tile_rows, token_dim), lambda m, r: (m, r, 0)),
                pl.BlockSpec((None, token_dim, hidden_dim), lambda m, r: (m, 0, 0)),
                pl.BlockSpec((None, 1, hidden_dim), lambda m, r: (m, 0, 0)),
                pl.BlockSpec((None, hidden_dim, sense_dim), lambda m, r: (m, 0, 0)),
                pl.BlockSpec((None, 1, sense_dim), lambda m, r: (m, 0, 0)),
            ],
            out_specs=pl.BlockSpec((None, tile_rows, sense_dim),
                                   lambda m, r: (m, r, 0)),
        ),
        compiler_params=pltpu.CompilerParams(
            # Every (modality, row-tile) grid point writes a distinct output
            # block -> both axes are safe to shard across TensorCores (v7x
            # megacore splits on whichever axis balances best).
            dimension_semantics=("parallel", "parallel"),
            # 32 MiB is within the scoped budget on v5e/v6e/v7x and leaves
            # room for the largest row tiles at these dims.
            vmem_limit_bytes=32 * 1024 * 1024,
        ),
    )(x_stacked, w1s, b1s, w2s, b2s)


def init_sense_for_token_params(key, token_dim, sense_dim, hidden_dim):
    """Deterministic per-modal parameter init (mimics nn.Linear default scale)."""
    k1, k2, k3, k4 = jax.random.split(key, 4)
    lim1 = 1.0 / jnp.sqrt(token_dim)
    lim2 = 1.0 / jnp.sqrt(hidden_dim)
    w1 = jax.random.uniform(k1, (token_dim, hidden_dim), jnp.float32, -lim1, lim1)
    b1 = jax.random.uniform(k2, (hidden_dim,), jnp.float32, -lim1, lim1)
    w2 = jax.random.uniform(k3, (hidden_dim, sense_dim), jnp.float32, -lim2, lim2)
    b2 = jax.random.uniform(k4, (sense_dim,), jnp.float32, -lim2, lim2)
    return {"w1": w1, "b1": b1, "w2": w2, "b2": b2}


class GetSenseForAllTokenLevel:
    """JAX/Pallas port of `get_sense_for_all_token_level`.

    Modalities sharing the same embedding shape run in a single fused
    pallas_call whose output is already the dim-0 concatenation; otherwise
    each modality uses its own call and a single concatenate at the end.
    """

    def __init__(self, modals, token_dim, sense_dim, hidden_dim, modal_idx, key,
                 compute_dtype=jnp.float32):
        self.modals = list(modals)
        self.modal_idx = modal_idx
        self.token_dim = token_dim
        self.sense_dim = sense_dim
        self.hidden_dim = hidden_dim
        # Set compute_dtype=jnp.bfloat16 for ~2x HBM / MXU savings if precision
        # allows (f32 accumulation is kept inside the kernel; the output dtype
        # follows compute_dtype so the write stream also halves).
        self.compute_dtype = compute_dtype
        keys = jax.random.split(key, len(self.modals))
        self.params = {
            modal: init_sense_for_token_params(k, token_dim, sense_dim, hidden_dim)
            for modal, k in zip(self.modals, keys)
        }
        # Cache the stacked + cast weights ONCE (no per-call stack/astype).
        cd = compute_dtype
        n = len(self.modals)
        self._pos = {m: i for i, m in enumerate(self.modals)}
        self._w1 = jnp.stack([self.params[m]["w1"] for m in self.modals]).astype(cd)
        self._b1 = jnp.stack([self.params[m]["b1"] for m in self.modals]
                             ).astype(cd).reshape(n, 1, hidden_dim)
        self._w2 = jnp.stack([self.params[m]["w2"] for m in self.modals]).astype(cd)
        self._b2 = jnp.stack([self.params[m]["b2"] for m in self.modals]
                             ).astype(cd).reshape(n, 1, sense_dim)

    def _gather_params(self, modal_list):
        idx = [self._pos[m] for m in modal_list]
        if idx == list(range(len(self.modals))):
            return self._w1, self._b1, self._w2, self._b2
        ia = jnp.asarray(idx, jnp.int32)        # tiny gather over small weights
        return self._w1[ia], self._b1[ia], self._w2[ia], self._b2[ia]

    def __call__(self, batch_embeddings):
        modal_list = list(batch_embeddings.keys())
        shapes = {batch_embeddings[m].shape for m in modal_list}

        if len(shapes) == 1:
            # Fused path: one kernel launch for all modalities; the kernel
            # output is already the dim-0 concatenation (just a free reshape).
            B, L, token_dim = next(iter(shapes))
            # The single stack below is the only wrapper-side copy of the
            # activations.  TODO(synk): accept a pre-stacked
            # [n_modals, B*L, token_dim] input to skip even this pass.
            x = jnp.stack(
                [batch_embeddings[m].reshape(B * L, token_dim) for m in modal_list]
            ).astype(self.compute_dtype)
            w1, b1, w2, b2 = self._gather_params(modal_list)
            out = _fused_sense_forward(x, w1, b1, w2, b2)  # [n_modals, B*L, sense]
            sense_embeddings = out.reshape(len(modal_list) * B, L, self.sense_dim)
            labels = jnp.concatenate(
                [jnp.full((B,), self.modal_idx[m], jnp.int32) for m in modal_list])
        else:
            # Fallback (ragged shapes): one call per modality, concatenate once.
            outs, labs = [], []
            for m in modal_list:
                emb = batch_embeddings[m]
                B, L, token_dim = emb.shape
                x = emb.reshape(1, B * L, token_dim).astype(self.compute_dtype)
                i = self._pos[m]
                out = _fused_sense_forward(
                    x, self._w1[i:i + 1], self._b1[i:i + 1],
                    self._w2[i:i + 1], self._b2[i:i + 1])
                outs.append(out.reshape(B, L, self.sense_dim))
                labs.append(jnp.full((B,), self.modal_idx[m], jnp.int32))
            sense_embeddings = jnp.concatenate(outs, axis=0)
            labels = jnp.concatenate(labs)

        return {"sense_embeddings": sense_embeddings, "labels": labels}


def _reference_mlp(x, p):
    h = jnp.maximum(jnp.einsum("bld,dh->blh", x, p["w1"]) + p["b1"], 0.0)
    return jnp.einsum("blh,hs->bls", h, p["w2"]) + p["b2"]


if __name__ == "__main__":
    # Small shapes consistent with the forward pass.
    modals = ["text", "image"]
    modal_idx = {"text": 0, "image": 1}
    token_dim, sense_dim, hidden_dim = 32, 16, 64
    B, L = 2, 8

    root = jax.random.PRNGKey(0)
    k_model, k_text, k_image = jax.random.split(root, 3)

    model = GetSenseForAllTokenLevel(
        modals, token_dim, sense_dim, hidden_dim, modal_idx, k_model
    )

    batch_embeddings = {
        "text": jax.random.normal(k_text, (B, L, token_dim), jnp.float32),
        "image": jax.random.normal(k_image, (B, L, token_dim), jnp.float32),
    }

    out = model(batch_embeddings)
    jax.block_until_ready(out["sense_embeddings"])
    jax.block_until_ready(out["labels"])

    # Shape checks + numerical check against a pure-JAX reference.
    assert out["sense_embeddings"].shape == (2 * B, L, sense_dim)
    assert out["labels"].shape == (2 * B,)
    ref = jnp.concatenate(
        [
            _reference_mlp(batch_embeddings["text"], model.params["text"]),
            _reference_mlp(batch_embeddings["image"], model.params["image"]),
        ],
        axis=0,
    )
    assert jnp.allclose(out["sense_embeddings"], ref, atol=1e-5, rtol=1e-5)
    assert jnp.array_equal(out["labels"], jnp.array([0, 0, 1, 1], jnp.int32))

    print("KERNEL_OK")
</pallas_src>

<mosaic_0001>
module attributes {stable_mosaic.version = 11 : i64} {
  func.func @_mlp_kernel(%arg0: i32, %arg1: i32, %arg2: memref<1x16x32xf32, #tpu.memory_space<vmem>>, %arg3: memref<1x32x64xf32, #tpu.memory_space<vmem>>, %arg4: memref<1x1x64xf32, #tpu.memory_space<vmem>>, %arg5: memref<1x64x16xf32, #tpu.memory_space<vmem>>, %arg6: memref<1x1x16xf32, #tpu.memory_space<vmem>>, %arg7: memref<1x16x16xf32, #tpu.memory_space<vmem>>) attributes {dimension_semantics = [#tpu.dimension_semantics<parallel>, #tpu.dimension_semantics<parallel>], iteration_bounds = array<i64: 2, 1>, scalar_prefetch = 0 : i64, scratch_operands = 0 : i64, tpu.core_type = #tpu.core_type<tc>, window_params = [{transform_indices = @transform_0, window_bounds = array<i64: 1, 16, 32>}, {transform_indices = @transform_1, window_bounds = array<i64: 1, 32, 64>}, {transform_indices = @transform_2, window_bounds = array<i64: 1, 1, 64>}, {transform_indices = @transform_3, window_bounds = array<i64: 1, 64, 16>}, {transform_indices = @transform_4, window_bounds = array<i64: 1, 1, 16>}, {transform_indices = @transform_5, window_bounds = array<i64: 1, 16, 16>}]} {
    %c0 = arith.constant 0 : index
    %c0_0 = arith.constant 0 : index
    %c0_1 = arith.constant 0 : index
    %0 = vector.load %arg3[%c0, %c0_0, %c0_1] : memref<1x32x64xf32, #tpu.memory_space<vmem>>, vector<1x32x64xf32>
    %1 = vector.shape_cast %0 : vector<1x32x64xf32> to vector<32x64xf32>
    %c0_2 = arith.constant 0 : index
    %c0_3 = arith.constant 0 : index
    %c0_4 = arith.constant 0 : index
    %2 = vector.load %arg5[%c0_2, %c0_3, %c0_4] : memref<1x64x16xf32, #tpu.memory_space<vmem>>, vector<1x64x16xf32>
    %3 = vector.shape_cast %2 : vector<1x64x16xf32> to vector<64x16xf32>
    %c0_5 = arith.constant 0 : index
    %c0_6 = arith.constant 0 : index
    %c0_7 = arith.constant 0 : index
    %4 = vector.load %arg4[%c0_5, %c0_6, %c0_7] : memref<1x1x64xf32, #tpu.memory_space<vmem>>, vector<1x1x64xf32>
    %5 = vector.shape_cast %4 : vector<1x1x64xf32> to vector<1x64xf32>
    %6 = vector.shape_cast %5 : vector<1x64xf32> to vector<1x64xf32>
    %7 = vector.broadcast %6 : vector<1x64xf32> to vector<16x64xf32>
    %c0_8 = arith.constant 0 : index
    %c0_9 = arith.constant 0 : index
    %c0_10 = arith.constant 0 : index
    %8 = vector.load %arg6[%c0_8, %c0_9, %c0_10] : memref<1x1x16xf32, #tpu.memory_space<vmem>>, vector<1x1x16xf32>
    %9 = vector.shape_cast %8 : vector<1x1x16xf32> to vector<1x16xf32>
    %10 = vector.shape_cast %9 : vector<1x16xf32> to vector<1x16xf32>
    %11 = vector.broadcast %10 : vector<1x16xf32> to vector<16x16xf32>
    %c0_11 = arith.constant 0 : index
    %c0_12 = arith.constant 0 : index
    %c0_13 = arith.constant 0 : index
    %12 = vector.load %arg2[%c0_11, %c0_12, %c0_13] : memref<1x16x32xf32, #tpu.memory_space<vmem>>, vector<1x16x32xf32>
    %13 = vector.shape_cast %12 : vector<1x16x32xf32> to vector<16x32xf32>
    %cst = arith.constant dense<0.000000e+00> : vector<16x64xf32>
    %14 = tpu.matmul %13, %1, %cst {dimension_numbers = #tpu.dot_dimension_numbers<[1], [0], [0], [1], [0, 0, 1, 1], [], []>} : vector<16x32xf32>, vector<32x64xf32>, vector<16x64xf32> -> vector<16x64xf32>
    %15 = arith.addf %14, %7 : vector<16x64xf32>
    %cst_14 = arith.constant 0.000000e+00 : f32
    %16 = vector.broadcast %cst_14 : f32 to vector<16x64xf32>
    %17 = arith.maximumf %15, %16 : vector<16x64xf32>
    %cst_15 = arith.constant dense<0.000000e+00> : vector<16x16xf32>
    %18 = tpu.matmul %17, %3, %cst_15 {dimension_numbers = #tpu.dot_dimension_numbers<[1], [0], [0], [1], [0, 0, 1, 1], [], []>} : vector<16x64xf32>, vector<64x16xf32>, vector<16x16xf32> -> vector<16x16xf32>
    %19 = arith.addf %18, %11 : vector<16x16xf32>
    %c0_16 = arith.constant 0 : index
    %c0_17 = arith.constant 0 : index
    %c0_18 = arith.constant 0 : index
    %20 = vector.load %arg7[%c0_16, %c0_17, %c0_18] : memref<1x16x16xf32, #tpu.memory_space<vmem>>, vector<1x16x16xf32>
    %21 = vector.shape_cast %20 : vector<1x16x16xf32> to vector<16x16xf32>
    %22 = vector.shape_cast %19 : vector<16x16xf32> to vector<1x16x16xf32>
    tpu.vector_store %arg7[%c0_16, %c0_17, %c0_18], %22 {strides = array<i32>} : memref<1x16x16xf32, #tpu.memory_space<vmem>>, vector<1x16x16xf32>,
    return
  }
  func.func @transform_0(%arg0: i32, %arg1: i32) -> (i32, i32, i32) {
    %c0_i32 = arith.constant 0 : i32
    %c0_i32_0 = arith.constant 0 : i32
    return %arg0, %arg1, %c0_i32 : i32, i32, i32
  }
  func.func @transform_1(%arg0: i32, %arg1: i32) -> (i32, i32, i32) {
    %c0_i32 = arith.constant 0 : i32
    %c0_i32_0 = arith.constant 0 : i32
    %c0_i32_1 = arith.constant 0 : i32
    return %arg0, %c0_i32, %c0_i32_0 : i32, i32, i32
  }
  func.func @transform_2(%arg0: i32, %arg1: i32) -> (i32, i32, i32) {
    %c0_i32 = arith.constant 0 : i32
    %c0_i32_0 = arith.constant 0 : i32
    %c0_i32_1 = arith.constant 0 : i32
    return %arg0, %c0_i32, %c0_i32_0 : i32, i32, i32
  }
  func.func @transform_3(%arg0: i32, %arg1: i32) -> (i32, i32, i32) {
    %c0_i32 = arith.constant 0 : i32
    %c0_i32_0 = arith.constant 0 : i32
    %c0_i32_1 = arith.constant 0 : i32
    return %arg0, %c0_i32, %c0_i32_0 : i32, i32, i32
  }
  func.func @transform_4(%arg0: i32, %arg1: i32) -> (i32, i32, i32) {
    %c0_i32 = arith.constant 0 : i32
    %c0_i32_0 = arith.constant 0 : i32
    %c0_i32_1 = arith.constant 0 : i32
    return %arg0, %c0_i32, %c0_i32_0 : i32, i32, i32
  }
  func.func @transform_5(%arg0: i32, %arg1: i32) -> (i32, i32, i32) {
    %c0_i32 = arith.constant 0 : i32
    %c0_i32_0 = arith.constant 0 : i32
    return %arg0, %arg1, %c0_i32 : i32, i32, i32
  }
}

</mosaic_0001>

<bundles_post_ra>
// kernel: _fused_sense_forward.1
= control target key start
LH: loop header
LB: loop body
LE: loop exit
PB: predicated region body
PF: predicated region fallthrough
CT: control target
= control target key end

     0   :  { %10 = vsyncpa [#allocation3], 0  ;;  %s1059_s0 = inlined_call_operand.vmem [shape: f32[2,16,32], index: 0, kind: input, shape index: {}]   ;;  %s1060_s1 = inlined_call_operand.vmem [shape: f32[2,32,64], index: 1, kind: input, shape index: {}]   ;;  %s1061_s2 = inlined_call_operand.vmem [shape: f32[2,1,64], index: 2, kind: input, shape index: {}]   ;;  %s1062_s3 = inlined_call_operand.vmem [shape: f32[2,64,16], index: 3, kind: input, shape index: {}]   ;;  %s1063_s4 = inlined_call_operand.vmem [shape: f32[2,1,16], index: 4, kind: input, shape index: {}]   ;;  %s1064_s5 = inlined_call_operand.hbm [shape: f32[2,16,16], index: 5, kind: output, shape index: {}]  }
   0x1   :  { %12 = vsyncpa [#allocation3 + $0x1], 0  ;;  %s923_s18 = smov 0   ;;  %s925_s19 = smov 0  }
   0x2   :  { %s927_s20 = smov 0   ;;  %s929_s21 = smov 0  }
   0x3   :  { %s931_s22 = smov 0   ;;  %s933_s23 = smov 0  }
   0x4 LB: > { %s656_s24 = sadd.s32 4294967295, %s888_s23   ;;  %s657_s25 = sadd.s32 4294967294, %s888_s23   ;;  %s888_s23 = sphi %s933_s23, %s18_s23   ;;  %s884_s22 = sphi %s931_s22, %s1071_s22   ;;  %s880_s21 = sphi %s929_s21, %s1070_s21   ;;  %s876_s20 = sphi %s927_s20, %s1069_s20   ;;  %s872_s19 = sphi %s925_s19, %s1068_s19   ;;  %s868_s18 = sphi %s923_s18, %s1067_s18  }
   0x5   : > { %s30_s26 = sadd.s32 1, %s884_s22  ;;  %s171_s27 = sadd.s32 1, %s876_s20 }
   0x6   : > { %p32_p0 = scmp.ge.s32.totalorder %s30_s26, 2  ;;  %p181_p1 = scmp.ne.s32.totalorder %s876_s20, %s872_s19 }
   0x7   : > { %p182_p2 = scmp.eq.s32.totalorder %s656_s24, 1  ;;  %p187_p3 = scmp.ne.s32.totalorder %s872_s19, %s868_s18 }
   0x8   : > { %s1073_s26 = smov (%p32_p0, %s30_s26), 0  ;;  %p188_p5 = scmp.eq.s32.totalorder %s657_s25, 1 }
   0x9   : > { %p963_p4 = por %p182_p2, %p181_p1  ;;  %s166_s29 = ssub.s32 %s884_s22, %s1073_s26 }
   0xa   : > { %p660_p6 = scmp.ge.s32.totalorder %s888_s23, 1  ;;  %p169_p7 = scmp.eq.s32.totalorder %s166_s29, 0 }
   0xb   : > { %p970_p8 = por %p188_p5, %p187_p3  ;;  %p247_p9 = scmp.lt.s32.totalorder %s888_s23, 3 }
   0xc   : > { %s976_s6 = scalar_select %p169_p7, %s876_s20, %s171_s27  }
   0xd   : > { %p248_p10 = pnand %p660_p6, %p247_p9 }
   0xe   : > { %p296_p11 = scmp.lt.s32.totalorder (!%p248_p10), %s880_s21, 1  ;;  %vm350_vm0 = vcmask (!%p248_p10), 261120   ;;  %vm434_vm1 = vcmask (!%p248_p10), 523264   ;;  %vm516_vm2 = vcmask (!%p248_p10), 130048   ;;  %s890_s27 = smov (!%p248_p10), [#allocation2]  }
   0xf   : > { %251 = sbr.rel (%p248_p10) target bundleno = 485 (0x1e5), region = 40  ;;  %s814_s29 = sshll.u32 (!%p248_p10), %s890_s27, 4  ;;  %s815_s29 = int_to_ptr.vmem [resolvable:$false] %s814_s29 }
  0x16   : > { %s980_s7 = scalar_select %p296_p11, %s880_s21, 1 }
  0x18   : > { %s680_s8 = sshll.u32 %s980_s7, 5  ;;  %s679_s9 = sshll.u32 %s980_s7, 4 }
  0x19   : > { %s309_s12 = scalar_lea.vmem %s1060_s1, %s680_s8  ;;  %s303_s15 = scalar_lea.vmem %s1059_s0, %s679_s9 }
  0x1a   : > { %v322_v0 = vld [vmem:[%s309_s12] sm:$0xff]  ;;  %v323_v1 = vld [vmem:[%s309_s12 + $0x8] sm:$0xff]  ;;  %v324_v2 = vld [vmem:[%s309_s12 + $0x10] sm:$0xff]  ;;  %s681_s16 = sshll.u32 %s980_s7, 6  ;;  %s312_s8 = scalar_lea.vmem %s1061_s2, %s980_s7 }
  0x1b   : > { %v729_v3 = vpack.c.bf16 %v323_v1, %v322_v0  ;;  %v325_v4 = vld [vmem:[%s309_s12 + $0x18] sm:$0xff]  ;;  %v348_v5 = vld [vmem:[%s303_s15] sm:$0xff]  ;;  %s317_s25 = scalar_lea.vmem %s1062_s3, %s681_s16  ;;  %v349_v16 = vld [vmem:[%s303_s15 + $0x8] sm:$0xff]  ;;  %s292_s9 = sand.u32 1, %s872_s19  }
  0x1c   : > { %v733_v6 = vpack.c.bf16 %v325_v4, %v324_v2  ;;  %707 = vmatprep.mubr.msk.f32.mxu0 %vm350_vm0, %v348_v5  ;;  %v326_v7 = vld [vmem:[%s317_s25] sm:$0xff]  ;;  %v327_v8 = vld [vmem:[%s317_s25 + $0x8] sm:$0xff]  ;;  %v328_v9 = vld [vmem:[%s317_s25 + $0x10] sm:$0xff]  ;;  %s661_s10 = sshll.u32 %s292_s9, 4  ;;  %s320_s13 = scalar_lea.vmem %s1063_s4, %s980_s7 }
  0x1d   : > { %730 = vmatprep.subr.bf16.mxu0 %v729_v3  ;;  %v737_v10 = vpack.c.bf16 %v327_v8, %v326_v7  ;;  %v329_v11 = vld [vmem:[%s317_s25 + $0x18] sm:$0xff]  ;;  %v330_v13 = vld [vmem:[%s317_s25 + $0x20] sm:$0xff]  ;;  %v331_v14 = vld [vmem:[%s317_s25 + $0x28] sm:$0xff]  ;;  %s294_s14 = scalar_lea.vmem [#allocation2], %s661_s10  ;;  %s682_s16 = sshll.u32 %s880_s21, 8 }
  0x1e   : > { %732 = vmatpush3.bf16.msra.mxu0 %v729_v3  ;;  %v741_v12 = vpack.c.bf16 %v329_v11, %v328_v9  ;;  %v745_v15 = vpack.c.bf16 %v331_v14, %v330_v13  ;;  %v332_v17 = vld [vmem:[%s317_s25 + $0x30] sm:$0xff]  ;;  %v333_v18 = vld [vmem:[%s317_s25 + $0x38] sm:$0xff]  ;;  %v668_v20 = vld [vmem:[%s312_s8] ss:$0 sm:$0xff]  ;;  %s535_s15 = sshll.u32 %s294_s14, 4  ;;  %s1011_s25 = scalar_lea.hbm %s1064_s5, %s682_s16  ;;  %s1006_s15 = int_to_ptr.vmem [resolvable:$true] %s535_s15 }
  0x1f   : > { %734 = vmatprep.subr.bf16.mxu0 %v733_v6  ;;  %738 = vmatprep.subr.bf16.mxu1 %v737_v10  ;;  %v749_v19 = vpack.c.bf16 %v333_v18, %v332_v17  ;;  %v669_v27 = vld [vmem:[%s320_s13] ss:$0 sm:$0xff]  ;;  %s1013_s7 = scalar_lea.sflag [#allocation3], %s292_s9  ;;  %s810_s21 = scalar_lea.vmem %s1006_s15, 256 }
  0x20   : > { %740 = vmatpush3.bf16.msra.mxu1 %v737_v10  ;;  %p811_p12 = scmp.ne.s32.totalorder %s1006_s15, %s810_s21  ;;  %s816_s8 = scalar_lea.vmem %s815_s29, 512 }
  0x21   : > { %742 = vmatprep.subr.bf16.mxu1 %v741_v12  ;;  %p817_p1 = scmp.lt.s32.totalorder %s1006_s15, %s815_s29  ;;  %p818_p2 = scmp.lt.s32.totalorder %s816_s8, %s810_s21 }
  0x22   : > { %736 = vmatpush3.bf16.msra.mxu0 %v733_v6  ;;  %p812_p13 = pnand %p811_p12, %p963_p4 }
  0x23   : > { %p819_p3 = por %p818_p2, %p817_p1 }
  0x24   : > { %744 = vmatpush3.bf16.msra.mxu1 %v741_v12  ;;  %p813_p0 = pneg %p812_p13 }
  0x25   : > { %708 = vmatmul.mubr.msk.f32.vlgmr.msra.gmra.mrb[0].mxu0 %vm350_vm0, %v349_v16  ;;  %746 = vmatprep.subr.bf16.mxu1 %v745_v15 }
  0x26   : > { %p820_p5 = pnand %p819_p3, %p813_p0 }
  0x28   : > { %748 = vmatpush3.bf16.msra.mxu1 %v745_v15 }
  0x29   : > { %750 = vmatprep.subr.bf16.mxu1 %v749_v19 }
  0x2c   : > { %752 = vmatpush3.bf16.msra.mxu1 %v749_v19 }
  0xf8   : > { %v709_v21 = vpop.f32.mrb[0].mxu0 }
  0xf9   : > { %v429_v22 = vadd.f32 %v709_v21, %v668_v20  ;;  %v423_v23 = vpop.f32.mrb[1].mxu0 }
  0xfa   : > { %v424_v24 = vadd.f32 %v668_v20, %v423_v23 }
  0xfb   : > { %v433_v26 = vmax.f32 %v429_v22, 0.0 }
  0xfc   : > { %v432_v25 = vmax.f32 %v424_v24, 0.0 }
  0xfe   : > { %726 = vmatprep.mubr.msk.f32.mxu1 %vm434_vm1, %v432_v25 }
  0xff   : > { %727 = vmatmul.mubr.msk.f32.vlgmr.msra.gmra.mrb[0].mxu1 %vm434_vm1, %v433_v26 }
 0x1d2   : > { %v728_v28 = vpop.f32.mrb[0].mxu1 }
 0x1d3   : > { %v513_v29 = vadd.f32 %v728_v28, %v669_v27  ;;  %v507_v30 = vpop.f32.mrb[1].mxu1 }
 0x1d4   : > { %v508_v31 = vadd.f32 %v669_v27, %v507_v30 }
 0x1d5   : > { %518 = vst.msk [vmem:[%s294_s14 + $0x8] sm:$0xff] %vm516_vm2, %v513_v29 }
 0x1d6   : > { %517 = vst.msk [vmem:[%s294_s14] sm:$0xff] %vm516_vm2, %v508_v31 }
 0x1d7   : > { %823 = shalt.err (!%p820_p5)
}
 0x1d8   : > { %s824_s9 = scalar_lea.hbm %s1011_s25, 256  ;;  %s828_s12 = scalar_lea.hbm %s1064_s5, 512 }
 0x1d9   : > { %p825_p6 = scmp.ne.s32.totalorder %s1011_s25, %s824_s9  ;;  %p829_p10 = scmp.lt.u32.totalorder %s1011_s25, %s1064_s5 }
 0x1da   : > { %p830_p11 = scmp.lt.u32.totalorder %s828_s12, %s824_s9  ;;  %p832_p13 = scmp.lt.u32.totalorder %s824_s9, %s1011_s25 }
 0x1db   : > { %p826_p7 = pnand %p825_p6, %p963_p4 }
 0x1dc   : > { %p831_p12 = por %p830_p11, %p829_p10 }
 0x1dd   : > { %p827_p9 = pneg %p826_p7 }
 0x1de   : > { %p833_p0 = por %p832_p13, %p831_p12 }
 0x1e0   : > { %p834_p1 = pnand %p833_p0, %p827_p9 }
 0x1e2   : > { %837 = shalt.err (!%p834_p1)
}
 0x1e3   : > { %s891_s16 = smov 128   ;;  %s892_s17 = smov 8  }
 0x1e4   : > { %753 = dma.vmem_to_hbm [thread:$0]  (%p963_p4), %s1006_s15, 256, %s1011_s25, %s1013_s7, %s891_s16, %s891_s16, %s892_s17  }
 0x1e5 PF: > { %p759_p2 = scmp.ge.s32.totalorder %s888_s23, 2  ;;  %s550_s24 = sand.u32 1, %s868_s18  }
 0x1e6   : > { %s551_s21 = scalar_lea.sflag [#allocation3], %s550_s24 }
 0x1e7   : > { %p756_p3 = pnand %p759_p2, %p970_p8 }
 0x1e9   : > { %863 = dma.done.wait (!%p756_p3), %s551_s21, 256  }
 0x1ea   : > { %865 = vsyncadd (!%p756_p3), %s551_s21, 4294967040  ;;  %s18_s23 = sadd.s32 1, %s888_s23   ;;  %s1067_s18 = smov %s872_s19 }
 0x1eb   : > { %p15_p5 = scmp.ge.s32.totalorder %s18_s23, 4   ;;  %s1068_s19 = smov %s876_s20 }
 0x1ec   : > { %s1069_s20 = smov %s976_s6  ;;  %s1070_s21 = smov %s884_s22 }
 0x1ed   : > { %s1071_s22 = smov %s1073_s26  ;;  %17 = sbr.rel (!%p15_p5) target bundleno = 4 (0x4), region = 87 }
 0x1f4   :  { %556 = vsyncpa [#allocation3], 1 }
 0x1f5   :  { %558 = vsyncpa [#allocation3 + $0x1], 1 }

</bundles_post_ra>
